<compile_context>
chip_gen: v7x
topology: tpu7x:2x2x1
jax: 0.10.0
libtpu: 0.0.40
codegen_flags: <defaults>
</compile_context>

<pallas_src>
import jax
import jax.numpy as jnp
from jax.experimental import pallas as pl
from jax.experimental.pallas import tpu as pltpu

_LANES = 1024                         # 8 full (8,128) f32 vregs wide
_TARGET_BLOCK_BYTES = 4 * 1024 * 1024  # ~4 MiB per tile
_SMALL_BYTES = 1 * 1024 * 1024         # below this, fused XLA maximum wins
_MIN_SPLIT_BYTES = 512 * 1024          # above this, force >=2 tiles (v7x 2 TCs)
_VMEM_LIMIT_BYTES = 32 * 1024 * 1024   # fits v5e/v6e/v7x physical VMEM


def _make_max_kernel(constant):
    """Elementwise maximum with the constant baked in via closure (one VPU vmax)."""
    def maximum_kernel(x_ref, o_ref):
        # Constant cast to the input dtype (torch.maximum would type-promote;
        # negligible here — see TODO about self.constant below).
        o_ref[...] = jnp.maximum(x_ref[...], jnp.asarray(constant, o_ref.dtype))
    return maximum_kernel


def _round_up(a, m):
    return ((a + m - 1) // m) * m


def gpt2raw_forward(x, constant, *, force_kernel=False):
    """GPT2Raw.forward: elementwise maximum(constant, x). Shape/layout agnostic."""
    orig_shape = x.shape
    dtype = x.dtype
    itemsize = dtype.itemsize
    n = x.size
    total_bytes = n * itemsize

    # Small inputs: dispatch overhead dominates; a single fused XLA maximum is
    # strictly faster than pad/reshape/pallas_call.
    if n == 0 or (total_bytes < _SMALL_BYTES and not force_kernel):
        return jnp.maximum(jnp.asarray(constant, dtype), x)

    # Build a 2-D view WITHOUT copying (reshape of a contiguous array is free).
    padded = False
    if n % _LANES == 0:
        cols = _LANES                      # perfectly lane-dense slab
        rows = n // _LANES
        x2 = x.reshape(rows, cols)
    elif x.ndim >= 2 and orig_shape[-1] >= 128:
        cols = orig_shape[-1]              # natural trailing dim (e.g. 273)
        rows = n // cols
        x2 = x.reshape(rows, cols)
    else:
        # TODO(synk): rare degenerate-shape fallback; pays one pad + one slice copy.
        padded = True
        cols = _LANES
        rows = pl.cdiv(n, _LANES)
        x2 = jnp.pad(x.reshape(-1), (0, rows * _LANES - n)).reshape(rows, cols)

    # Row tile sized to ~4 MiB per block (multiple of 8 sublanes); the ragged
    # final block is masked by Pallas — no round-up, no junk rows.
    row_bytes = cols * itemsize
    tr = max(8, (_TARGET_BLOCK_BYTES // max(row_bytes, 1)) // 8 * 8)
    if tr >= rows:
        if total_bytes > _MIN_SPLIT_BYTES and rows >= 16:
            # Keep >=2 balanced tiles so both v7x TensorCores get grid work.
            tr = _round_up(pl.cdiv(rows, 2), 8)
        else:
            tr = rows                       # single full-extent block
    n_tiles = pl.cdiv(rows, tr)

    out2 = pl.pallas_call(
        _make_max_kernel(constant),
        out_shape=jax.ShapeDtypeStruct((rows, cols), dtype),
        grid=(n_tiles,),
        in_specs=[pl.BlockSpec((tr, cols), lambda i: (i, 0))],
        out_specs=pl.BlockSpec((tr, cols), lambda i: (i, 0)),
        input_output_aliases={0: 0},        # donate input slab to the output
        compiler_params=pltpu.CompilerParams(
            dimension_semantics=("parallel",),
            vmem_limit_bytes=_VMEM_LIMIT_BYTES,
        ),
    )(x2)

    if padded:
        return out2.reshape(-1)[:n].reshape(orig_shape)
    return out2.reshape(orig_shape)


if __name__ == "__main__":
    # GPT2Config(n_embd=273, n_layer=4, n_head=3) -> hidden size 273.
    # Small shapes: batch=2, seq=8, hidden=273.
    B, S, H = 2, 8, 273
    key = jax.random.PRNGKey(0)
    x_small = jax.random.normal(key, (B, S, H), dtype=jnp.float32)

    # TODO(synk): GPT2Raw.__init__ never sets self.constant; using 0.0 as the
    # deterministic stand-in value.
    constant = 0.0

    ref_small = jnp.maximum(jnp.float32(constant), x_small)

    # Default path for tiny inputs (fused XLA maximum).
    out_small = jax.block_until_ready(gpt2raw_forward(x_small, constant))
    assert out_small.shape == (B, S, H) and out_small.dtype == x_small.dtype
    assert jnp.allclose(out_small, ref_small), "small (XLA path) mismatch"

    # Force the Pallas kernel on the small input (single full-extent block).
    out_small_k = jax.block_until_ready(
        gpt2raw_forward(x_small, constant, force_kernel=True))
    assert out_small_k.shape == (B, S, H) and out_small_k.dtype == x_small.dtype
    assert jnp.allclose(out_small_k, ref_small), "small (kernel path) mismatch"

    # Larger ragged input: multiple grid steps + masked final row block, jitted.
    B2, S2 = 4, 1001
    x_big = jax.random.normal(jax.random.PRNGKey(1), (B2, S2, H), jnp.float32)
    ref_big = jnp.maximum(jnp.float32(constant), x_big)
    out_big = jax.block_until_ready(
        jax.jit(lambda a: gpt2raw_forward(a, constant))(x_big))
    assert out_big.shape == (B2, S2, H) and out_big.dtype == x_big.dtype
    assert jnp.allclose(out_big, ref_big), "big (kernel path) mismatch"

    print("KERNEL_OK")
</pallas_src>

<mosaic_0001>
module attributes {stable_mosaic.version = 11 : i64} {
  func.func @maximum_kernel(%arg0: i32, %arg1: memref<16x273xf32, #tpu.memory_space<vmem>>, %arg2: memref<16x273xf32, #tpu.memory_space<vmem>>) attributes {dimension_semantics = [#tpu.dimension_semantics<parallel>], iteration_bounds = array<i64: 1>, scalar_prefetch = 0 : i64, scratch_operands = 0 : i64, tpu.core_type = #tpu.core_type<tc>, window_params = [{transform_indices = @transform_0, window_bounds = array<i64: 16, 273>}, {transform_indices = @transform_1, window_bounds = array<i64: 16, 273>}]} {
    %c0 = arith.constant 0 : index
    %c0_0 = arith.constant 0 : index
    %0 = vector.load %arg1[%c0, %c0_0] : memref<16x273xf32, #tpu.memory_space<vmem>>, vector<16x273xf32>
    %cst = arith.constant 0.000000e+00 : f32
    %1 = vector.broadcast %cst : f32 to vector<16x273xf32>
    %2 = arith.maximumf %0, %1 : vector<16x273xf32>
    %c0_1 = arith.constant 0 : index
    %c0_2 = arith.constant 0 : index
    %3 = vector.load %arg2[%c0_1, %c0_2] : memref<16x273xf32, #tpu.memory_space<vmem>>, vector<16x273xf32>
    tpu.vector_store %arg2[%c0_1, %c0_2], %2 {strides = array<i32>} : memref<16x273xf32, #tpu.memory_space<vmem>>, vector<16x273xf32>,
    return
  }
  func.func @transform_0(%arg0: i32) -> (i32, i32) {
    %c0_i32 = arith.constant 0 : i32
    %c0_i32_0 = arith.constant 0 : i32
    return %arg0, %c0_i32 : i32, i32
  }
  func.func @transform_1(%arg0: i32) -> (i32, i32) {
    %c0_i32 = arith.constant 0 : i32
    %c0_i32_0 = arith.constant 0 : i32
    return %arg0, %c0_i32 : i32, i32
  }
}

</mosaic_0001>

<bundles_post_ra>
// kernel: tpu_custom_call.1
= control target key start
LH: loop header
LB: loop body
LE: loop exit
PB: predicated region body
PF: predicated region fallthrough
CT: control target
= control target key end

     0   :  { %6 = vsyncpa [#allocation3], 0  ;;  %s157_s0 = inlined_call_operand.hbm [shape: f32[16,273], index: 0, kind: input, shape index: {}, may-alias: {0,1}]   ;;  %s158_s1 = inlined_call_operand.hbm [shape: f32[16,273], index: 1, kind: output, shape index: {}, may-alias: {0,1}]  }
   0x1   :  { %7 = vsyncpa [#allocation4], 0  ;;  %s111_s6 = smov [#allocation2]   ;;  %s63_s10 = scalar_lea.hbm %s157_s0, 768 }
   0x2   :  { %s13_s7 = sshll.u32 %s111_s6, 4  ;;  %p64_p0 = scmp.ne.s32.totalorder %s157_s0, %s63_s10  ;;  %s14_s7 = int_to_ptr.vmem [resolvable:$true] %s13_s7 }
   0x3   :  { %p67_p1 = scmp.lt.u32.totalorder %s63_s10, %s157_s0 }
   0x5   :  { %p69_p2 = pnand %p67_p1, %p64_p0 }
   0x7   :  { %72 = shalt.err (!%p69_p2)
}
   0x8   :  { %s73_s15 = scalar_lea.vmem %s14_s7, 768  ;;  %p78_p4 = scmp.lt.s32.totalorder %s14_s7, %s14_s7 }
   0x9   :  { %p74_p3 = scmp.ne.s32.totalorder %s14_s7, %s73_s15  ;;  %p79_p5 = scmp.lt.s32.totalorder %s73_s15, %s73_s15 }
   0xb   :  { %p80_p6 = por %p79_p5, %p78_p4 }
   0xd   :  { %p81_p7 = pnand %p80_p6, %p74_p3 }
   0xf   :  { %84 = shalt.err (!%p81_p7)
}
  0x10   :  { %s112_s16 = smov 384   ;;  %s113_s17 = smov 24  }
  0x11   :  { %19 = dma.hbm_to_vmem [thread:$0]  %s157_s0, 768, %s14_s7, [#allocation3], %s112_s16, %s112_s16, %s113_s17  }
  0x12   :  { %107 = dma.done.wait [#allocation3], 768  }
  0x13   :  { %108 = vsyncadd [#allocation3], 4294966528  ;;  %s114_s20 = smov [#allocation5]   ;;  %v23_v0 = vld [vmem:[#allocation2] sm:$0xff]  ;;  %v24_v1 = vld [vmem:[#allocation2 + $0x8] sm:$0xff]  ;;  %vm37_vm0 = vcmask 138240  }
  0x14   :  { %s47_s21 = sshll.u32 %s114_s20, 4  ;;  %v25_v2 = vld [vmem:[#allocation2 + $0x10] sm:$0xff]  ;;  %v29_v3 = vmax.f32 %v23_v0, 0.0  ;;  %v30_v4 = vmax.f32 %v24_v1, 0.0  ;;  %v26_v6 = vld [vmem:[#allocation2 + $0x18] sm:$0xff]  ;;  %v27_v7 = vld [vmem:[#allocation2 + $0x20] sm:$0xff]  ;;  %s48_s21 = int_to_ptr.vmem [resolvable:$true] %s47_s21 }
  0x15   :  { %v31_v5 = vmax.f32 %v25_v2, 0.0  ;;  %v28_v8 = vld [vmem:[#allocation2 + $0x28] sm:$0xff]  ;;  %v32_v9 = vmax.f32 %v26_v6, 0.0  ;;  %v33_v10 = vmax.f32 %v27_v7, 0.0  ;;  %s85_s0 = scalar_lea.vmem %s48_s21, 768  ;;  %p90_p9 = scmp.lt.s32.totalorder %s48_s21, %s48_s21 }
  0x16   :  { %v34_v11 = vmax.f32 %v28_v8, 0.0  ;;  %35 = vst [vmem:[#allocation5] sm:$0xff] %v29_v3  ;;  %36 = vst [vmem:[#allocation5 + $0x8] sm:$0xff] %v30_v4  ;;  %p86_p8 = scmp.ne.s32.totalorder %s48_s21, %s85_s0  ;;  %p91_p10 = scmp.lt.s32.totalorder %s85_s0, %s85_s0 }
  0x17   :  { %38 = vst.msk [vmem:[#allocation5 + $0x10] sm:$0xff] %vm37_vm0, %v31_v5  ;;  %39 = vst [vmem:[#allocation5 + $0x18] sm:$0xff] %v32_v9 }
  0x18   :  { %40 = vst [vmem:[#allocation5 + $0x20] sm:$0xff] %v33_v10  ;;  %41 = vst.msk [vmem:[#allocation5 + $0x28] sm:$0xff] %vm37_vm0, %v34_v11  ;;  %p92_p11 = por %p91_p10, %p90_p9 }
  0x1a   :  { %p93_p12 = pnand %p92_p11, %p86_p8 }
  0x1c   :  { %96 = shalt.err (!%p93_p12)
}
  0x1d   :  { %s97_s24 = scalar_lea.hbm %s158_s1, 768 }
  0x1e   :  { %p98_p13 = scmp.ne.s32.totalorder %s158_s1, %s97_s24  ;;  %p101_p0 = scmp.lt.u32.totalorder %s97_s24, %s158_s1 }
  0x20   :  { %p103_p1 = pnand %p101_p0, %p98_p13 }
  0x22   :  { %106 = shalt.err (!%p103_p1)
}
  0x23   :  { %53 = dma.vmem_to_hbm [thread:$0]  %s48_s21, 768, %s158_s1, [#allocation4], %s112_s16, %s112_s16, %s113_s17  }
  0x24   :  { %109 = dma.done.wait [#allocation4], 768  }
  0x25   :  { %110 = vsyncadd [#allocation4], 4294966528 }
  0x26   :  { %57 = vsyncpa [#allocation3], 1 }
  0x27   :  { %58 = vsyncpa [#allocation4], 1 }

</bundles_post_ra>
